<compile_context>
chip_gen: v5e
topology: v5e:2x2
jax: 0.10.0
libtpu: 0.0.40
codegen_flags: <defaults>
</compile_context>

<pallas_src>
import functools

import jax
import jax.numpy as jnp
from jax.experimental import pallas as pl
from jax.experimental.pallas import tpu as pltpu


# ----------------------------------------------------------------------------
# In-kernel helpers
# ----------------------------------------------------------------------------
def _layer_norm(x, g, b, eps=1e-5):
    # Two-pass form (center before squaring): robust when |mean| >> std.
    mu = jnp.mean(x, axis=-1, keepdims=True)
    xc = x - mu
    var = jnp.mean(xc * xc, axis=-1, keepdims=True)
    return xc * jax.lax.rsqrt(var + eps) * g + b


def _gelu_exact(x):
    # torch.nn.functional.gelu default (erf-based, non-approximate)
    return 0.5 * x * (1.0 + jax.lax.erf(x * (2.0 ** -0.5)))


# ----------------------------------------------------------------------------
# Tiling / config helpers
# ----------------------------------------------------------------------------
def _seq_tile(n, pref):
    # Full axis if small; otherwise the preferred tile (caller pads to multiple).
    return n if n <= pref else pref


def _divisor_tile(n, pref, quantum=128):
    # Largest multiple-of-`quantum` divisor of n that is <= pref (else full n).
    if n <= pref:
        return n
    t = (pref // quantum) * quantum
    while t >= quantum:
        if n % t == 0:
            return t
        t -= quantum
    return n


def _pad_axis(x, axis, mult):
    n = x.shape[axis]
    pad = (-n) % mult
    if pad == 0:
        return x
    widths = [(0, 0)] * x.ndim
    widths[axis] = (0, pad)
    return jnp.pad(x, widths)


def chip_config():
    """Per-TPU-generation tile sizes and VMEM limit."""
    try:
        kind = jax.devices()[0].device_kind.lower()
    except Exception:  # pragma: no cover
        kind = ""
    if "v7" in kind:                                   # 64 MiB physical VMEM
        return dict(block_q=256, block_kv=256, block_f=512,
                    vmem_bytes=40 * 1024 * 1024)
    if "v5 lite" in kind or "v5e" in kind:             # weakest VPU / vst budget
        return dict(block_q=256, block_kv=256, block_f=1024,
                    vmem_bytes=96 * 1024 * 1024)
    # v6e and other 128 MiB-VMEM parts: larger tiles amortize grid overhead.
    return dict(block_q=512, block_kv=512, block_f=1024,
                vmem_bytes=96 * 1024 * 1024)


def _probe_kernel(x_ref, o_ref):
    o_ref[...] = x_ref[...]


@functools.lru_cache(maxsize=None)
def _buffered_weights_supported():
    """Runtime probe: can constant-index inputs be single-buffered?"""
    if not hasattr(pl, "Buffered"):
        return False
    try:
        spec = pl.BlockSpec((8, 128), lambda i: (0, 0),
                            pipeline_mode=pl.Buffered(1))
    except Exception:
        return False
    try:
        fn = pl.pallas_call(
            _probe_kernel,
            out_shape=jax.ShapeDtypeStruct((8, 128), jnp.float32),
            grid=(1,),
            in_specs=[spec],
            out_specs=pl.BlockSpec((8, 128), lambda i: (0, 0)))
        jax.block_until_ready(fn(jnp.zeros((8, 128), jnp.float32)))
        return True
    except Exception:
        return False


def _const_spec(shape, index_map):
    """BlockSpec for constant-index operands (weights/biases): single-buffered
    when supported, to avoid wasting VMEM on double buffers that never change."""
    if _buffered_weights_supported():
        return pl.BlockSpec(shape, index_map, pipeline_mode=pl.Buffered(1))
    return pl.BlockSpec(shape, index_map)


# ----------------------------------------------------------------------------
# Kernel 0: K/V projection (hoisted out of the flash loop), head-major output
#   grid = (batch, kv tiles)   — runs once per token, not once per query tile
# ----------------------------------------------------------------------------
def kv_proj_kernel(*refs, n_heads, d_head, apply_ln):
    if apply_ln:
        ctx_ref, g_ref, b_ref, wkv_ref, k_ref, v_ref = refs
    else:
        ctx_ref, wkv_ref, k_ref, v_ref = refs

    ctx = ctx_ref[...].astype(jnp.float32)                       # (tm, Dc)
    if apply_ln:
        ctx = _layer_norm(ctx, g_ref[...], b_ref[...])
    kv = jnp.dot(ctx.astype(jnp.bfloat16), wkv_ref[...],
                 preferred_element_type=jnp.float32)             # (tm, 2*inner)
    tm = kv.shape[0]
    inner = n_heads * d_head
    # Single transpose per token tile (cold path) so the flash hot loop never
    # has to transpose K/V again.
    k = jnp.transpose(kv[:, :inner].reshape(tm, n_heads, d_head), (1, 0, 2))
    v = jnp.transpose(kv[:, inner:].reshape(tm, n_heads, d_head), (1, 0, 2))
    k_ref[...] = k.astype(jnp.bfloat16)
    v_ref[...] = v.astype(jnp.bfloat16)


def project_kv(ctx, ln_g, ln_b, wkv, *, n_heads, d_head, apply_ln,
               block_m, vmem_bytes):
    B, Mp, Dc = ctx.shape
    inner = n_heads * d_head
    tm = block_m

    in_specs = [pl.BlockSpec((None, tm, Dc), lambda b, mi: (b, mi, 0))]
    operands = [ctx]
    if apply_ln:
        in_specs += [_const_spec((1, Dc), lambda b, mi: (0, 0)),
                     _const_spec((1, Dc), lambda b, mi: (0, 0))]
        operands += [ln_g, ln_b]
    in_specs += [_const_spec((Dc, 2 * inner), lambda b, mi: (0, 0))]
    operands += [wkv]

    kernel = functools.partial(kv_proj_kernel, n_heads=n_heads, d_head=d_head,
                               apply_ln=apply_ln)
    return pl.pallas_call(
        kernel,
        out_shape=(jax.ShapeDtypeStruct((B, n_heads, Mp, d_head), jnp.bfloat16),
                   jax.ShapeDtypeStruct((B, n_heads, Mp, d_head), jnp.bfloat16)),
        grid=(B, Mp // tm),
        in_specs=in_specs,
        out_specs=(
            pl.BlockSpec((None, n_heads, tm, d_head), lambda b, mi: (b, 0, mi, 0)),
            pl.BlockSpec((None, n_heads, tm, d_head), lambda b, mi: (b, 0, mi, 0)),
        ),
        compiler_params=pltpu.CompilerParams(
            dimension_semantics=("parallel", "parallel"),
            vmem_limit_bytes=vmem_bytes),
    )(*operands)


# ----------------------------------------------------------------------------
# Kernel 1: LayerNorm + Q projection + online-softmax flash attention +
#           output projection + residual
#   grid = (batch, query tiles, kv tiles)   kv axis = reduction ("arbitrary")
# ----------------------------------------------------------------------------
def flash_attn_kernel(x_ref, k_ref, v_ref, g_ref, b_ref, wq_ref, wo_ref, bo_ref,
                      o_ref, q_sc, m_sc, l_sc, acc_sc, *,
                      n_heads, d_head, kv_len, kv_padded):
    ki = pl.program_id(2)
    H, dh = n_heads, d_head
    inner = H * dh

    # --- per query tile (ki == 0): LN + Q projection, scratch reset ---------
    @pl.when(ki == 0)
    def _init():
        xn = _layer_norm(x_ref[...].astype(jnp.float32), g_ref[...], b_ref[...])
        # dh**-0.5 scale is folded into Wq (see prepare_params).
        q = jnp.dot(xn.astype(jnp.bfloat16), wq_ref[...],
                    preferred_element_type=jnp.float32)          # (tq, inner)
        tq = q.shape[0]
        q_sc[...] = jnp.transpose(q.reshape(tq, H, dh),
                                  (1, 0, 2)).astype(jnp.bfloat16)  # (H, tq, dh)
        m_sc[...] = jnp.full(m_sc.shape, -1e30, dtype=m_sc.dtype)
        l_sc[...] = jnp.zeros_like(l_sc)
        acc_sc[...] = jnp.zeros_like(acc_sc)

    # --- hot loop: precomputed head-major K/V tiles (no transpose, no proj) --
    k = k_ref[...]                                               # (H, tk, dh) bf16
    v = v_ref[...]
    # TODO(synk): dh < 128 underfeeds the 256-wide MXU on v6e/v7x; folding head
    # pairs would raise MXU utilization but changes the head-major layout.
    s = jnp.einsum("hqd,hkd->hqk", q_sc[...], k,
                   preferred_element_type=jnp.float32)           # (H, tq, tk)
    if kv_padded:                       # static: only emitted when M was padded
        tk = k.shape[1]
        pos = ki * tk + jax.lax.broadcasted_iota(jnp.int32, (1, 1, tk), 2)
        s = jnp.where(pos < kv_len, s, -1e30)

    m_prev = m_sc[...]
    m_new = jnp.maximum(m_prev, jnp.max(s, axis=-1, keepdims=True))
    alpha = jnp.exp(m_prev - m_new)
    p = jnp.exp(s - m_new)
    l_sc[...] = alpha * l_sc[...] + jnp.sum(p, axis=-1, keepdims=True)
    acc_sc[...] = alpha * acc_sc[...] + jnp.einsum(
        "hqk,hkd->hqd", p.astype(jnp.bfloat16), v,
        preferred_element_type=jnp.float32)
    m_sc[...] = m_new

    # --- finalize: normalize, output projection, bias, residual -------------
    @pl.when(ki == pl.num_programs(2) - 1)
    def _finalize():
        attn = acc_sc[...] * pl.reciprocal(l_sc[...], approx=True)  # (H, tq, dh)
        tq = attn.shape[1]
        attn2d = jnp.transpose(attn, (1, 0, 2)).reshape(tq, inner)
        y = jnp.dot(attn2d.astype(jnp.bfloat16), wo_ref[...],
                    preferred_element_type=jnp.float32) + bo_ref[...]
        o_ref[...] = (y + x_ref[...].astype(jnp.float32)).astype(o_ref.dtype)


def attention_block(x, ctx, ln_g, ln_b, wq_s, wkv, wo, bo, *,
                    n_heads, d_head, self_context, cfg):
    B, N, D = x.shape
    M, Dc = ctx.shape[1], ctx.shape[2]
    H, dh = n_heads, d_head
    inner = H * dh

    tq = _seq_tile(N, cfg["block_q"])
    tk = _seq_tile(M, cfg["block_kv"])
    xp = _pad_axis(x, 1, tq)
    cp = _pad_axis(ctx, 1, tk)
    Np, Mp = xp.shape[1], cp.shape[1]

    # K/V projection (and ctx LayerNorm on the self path) runs once per token.
    k, v = project_kv(cp, ln_g, ln_b, wkv, n_heads=H, d_head=dh,
                      apply_ln=self_context, block_m=tk,
                      vmem_bytes=cfg["vmem_bytes"])

    kernel = functools.partial(flash_attn_kernel, n_heads=H, d_head=dh,
                               kv_len=M, kv_padded=(Mp != M))
    out = pl.pallas_call(
        kernel,
        out_shape=jax.ShapeDtypeStruct((B, Np, D), x.dtype),
        grid=(B, Np // tq, Mp // tk),
        in_specs=[
            pl.BlockSpec((None, tq, D), lambda b, qi, ki: (b, qi, 0)),        # x
            pl.BlockSpec((None, H, tk, dh), lambda b, qi, ki: (b, 0, ki, 0)),  # K
            pl.BlockSpec((None, H, tk, dh), lambda b, qi, ki: (b, 0, ki, 0)),  # V
            _const_spec((1, D), lambda b, qi, ki: (0, 0)),                    # ln gamma
            _const_spec((1, D), lambda b, qi, ki: (0, 0)),                    # ln beta
            _const_spec((D, inner), lambda b, qi, ki: (0, 0)),                # Wq (scaled)
            _const_spec((inner, D), lambda b, qi, ki: (0, 0)),                # Wo
            _const_spec((1, D), lambda b, qi, ki: (0, 0)),                    # bo
        ],
        out_specs=pl.BlockSpec((None, tq, D), lambda b, qi, ki: (b, qi, 0)),
        scratch_shapes=[
            pltpu.VMEM((H, tq, dh), jnp.bfloat16),   # Q (head-major, pre-scaled)
            pltpu.VMEM((H, tq, 1), jnp.float32),     # running max
            pltpu.VMEM((H, tq, 1), jnp.float32),     # running sum
            pltpu.VMEM((H, tq, dh), jnp.float32),    # output accumulator
        ],
        compiler_params=pltpu.CompilerParams(
            dimension_semantics=("parallel", "parallel", "arbitrary"),
            vmem_limit_bytes=cfg["vmem_bytes"]),
    )(xp, k, v, ln_g, ln_b, wq_s, wo, bo)
    return out[:, :N, :] if Np != N else out


# ----------------------------------------------------------------------------
# Kernel 2: LayerNorm + GEGLU feed-forward (hidden dim tiled) + residual
#   grid = (batch, query tiles, hidden-dim tiles)   hidden axis = reduction
# ----------------------------------------------------------------------------
def ff_kernel(x_ref, g_ref, b_ref, w1v_ref, w1g_ref, b1v_ref, b1g_ref,
              w2_ref, b2_ref, o_ref, xn_sc, acc_sc):
    fi = pl.program_id(2)

    @pl.when(fi == 0)
    def _init():
        xn = _layer_norm(x_ref[...].astype(jnp.float32), g_ref[...], b_ref[...])
        xn_sc[...] = xn.astype(jnp.bfloat16)      # LN computed once per tile
        acc_sc[...] = jnp.zeros_like(acc_sc)

    xn = xn_sc[...]                                               # (tq, D) bf16
    val = jnp.dot(xn, w1v_ref[...], preferred_element_type=jnp.float32) + b1v_ref[...]
    gate = jnp.dot(xn, w1g_ref[...], preferred_element_type=jnp.float32) + b1g_ref[...]
    h = val * _gelu_exact(gate)                   # GEGLU chunk (dropout=0 -> no-op)
    acc_sc[...] += jnp.dot(h.astype(jnp.bfloat16), w2_ref[...],
                           preferred_element_type=jnp.float32)

    @pl.when(fi == pl.num_programs(2) - 1)
    def _finalize():
        y = acc_sc[...] + b2_ref[...] + x_ref[...].astype(jnp.float32)
        o_ref[...] = y.astype(o_ref.dtype)


def feedforward_block(x, ln_g, ln_b, w1v, w1g, b1v, b1g, w2, b2, *, cfg):
    B, N, D = x.shape
    F = w1v.shape[1]                               # 4 * D
    tq = _seq_tile(N, cfg["block_q"])
    tf = _divisor_tile(F, cfg["block_f"], quantum=128)
    xp = _pad_axis(x, 1, tq)
    Np = xp.shape[1]

    out = pl.pallas_call(
        ff_kernel,
        out_shape=jax.ShapeDtypeStruct((B, Np, D), x.dtype),
        grid=(B, Np // tq, F // tf),
        in_specs=[
            pl.BlockSpec((None, tq, D), lambda b, qi, fi: (b, qi, 0)),
            _const_spec((1, D), lambda b, qi, fi: (0, 0)),
            _const_spec((1, D), lambda b, qi, fi: (0, 0)),
            pl.BlockSpec((D, tf), lambda b, qi, fi: (0, fi)),     # W1 value half
            pl.BlockSpec((D, tf), lambda b, qi, fi: (0, fi)),     # W1 gate half
            pl.BlockSpec((1, tf), lambda b, qi, fi: (0, fi)),     # b1 value half
            pl.BlockSpec((1, tf), lambda b, qi, fi: (0, fi)),     # b1 gate half
            pl.BlockSpec((tf, D), lambda b, qi, fi: (fi, 0)),     # W2 chunk
            _const_spec((1, D), lambda b, qi, fi: (0, 0)),        # b2
        ],
        out_specs=pl.BlockSpec((None, tq, D), lambda b, qi, fi: (b, qi, 0)),
        scratch_shapes=[
            pltpu.VMEM((tq, D), jnp.bfloat16),    # LN(x), reused over f chunks
            pltpu.VMEM((tq, D), jnp.float32),     # fp32 accumulator
        ],
        compiler_params=pltpu.CompilerParams(
            dimension_semantics=("parallel", "parallel", "arbitrary"),
            vmem_limit_bytes=cfg["vmem_bytes"]),
    )(xp, ln_g, ln_b, w1v, w1g, b1v, b1g, w2, b2)
    return out[:, :N, :] if Np != N else out


# ----------------------------------------------------------------------------
# One-time weight preparation (bf16 casts, fused K|V, scaled Wq, split GEGLU W1)
# ----------------------------------------------------------------------------
def prepare_params(p, *, d_head):
    scale = d_head ** -0.5
    bf = jnp.bfloat16

    def attn(prefix):
        return dict(
            wq=(p[f"{prefix}_wq"] * scale).astype(bf),           # scale folded in
            wkv=jnp.concatenate([p[f"{prefix}_wk"], p[f"{prefix}_wv"]],
                                axis=1).astype(bf),              # fused K|V
            wo=p[f"{prefix}_wo"].astype(bf),
            bo=p[f"{prefix}_bo"],
        )

    F = p["ff_w2"].shape[0]
    return dict(
        attn1=attn("attn1"), attn2=attn("attn2"),
        norm1_g=p["norm1_g"], norm1_b=p["norm1_b"],
        norm2_g=p["norm2_g"], norm2_b=p["norm2_b"],
        norm3_g=p["norm3_g"], norm3_b=p["norm3_b"],
        ff_w1v=p["ff_w1"][:, :F].astype(bf),
        ff_w1g=p["ff_w1"][:, F:].astype(bf),
        ff_b1v=p["ff_b1"][:, :F],
        ff_b1g=p["ff_b1"][:, F:],
        ff_w2=p["ff_w2"].astype(bf),
        ff_b2=p["ff_b2"],
    )


# ----------------------------------------------------------------------------
# Full BasicTransformerBlock forward
# ----------------------------------------------------------------------------
def basic_transformer_block(x, context, pp, *, n_heads, d_head, cfg=None):
    cfg = cfg or chip_config()
    # x = attn1(norm1(x)) + x          (self-attention)
    a1 = pp["attn1"]
    x = attention_block(x, x, pp["norm1_g"], pp["norm1_b"], a1["wq"], a1["wkv"],
                        a1["wo"], a1["bo"], n_heads=n_heads, d_head=d_head,
                        self_context=True, cfg=cfg)
    # x = attn2(norm2(x), context) + x (cross-attn; context=None -> self)
    a2 = pp["attn2"]
    self_ctx2 = context is None
    ctx2 = x if self_ctx2 else context
    x = attention_block(x, ctx2, pp["norm2_g"], pp["norm2_b"], a2["wq"], a2["wkv"],
                        a2["wo"], a2["bo"], n_heads=n_heads, d_head=d_head,
                        self_context=self_ctx2, cfg=cfg)
    # x = ff(norm3(x)) + x             (GEGLU feed-forward)
    x = feedforward_block(x, pp["norm3_g"], pp["norm3_b"], pp["ff_w1v"],
                          pp["ff_w1g"], pp["ff_b1v"], pp["ff_b1g"],
                          pp["ff_w2"], pp["ff_b2"], cfg=cfg)
    return x


# ----------------------------------------------------------------------------
# Pure-JAX fp32 reference (same math) for validation
# ----------------------------------------------------------------------------
def _ref_ln(x, g, b, eps=1e-5):
    mu = jnp.mean(x, -1, keepdims=True)
    var = jnp.mean((x - mu) ** 2, -1, keepdims=True)
    return (x - mu) / jnp.sqrt(var + eps) * g + b


def _ref_attn(xn, ctx, wq, wk, wv, wo, bo, n_heads, d_head):
    q, k, v = xn @ wq, ctx @ wk, ctx @ wv
    B, N, _ = q.shape
    M = k.shape[1]
    q = q.reshape(B, N, n_heads, d_head).transpose(0, 2, 1, 3)
    k = k.reshape(B, M, n_heads, d_head).transpose(0, 2, 1, 3)
    v = v.reshape(B, M, n_heads, d_head).transpose(0, 2, 1, 3)
    s = jnp.einsum("bhnd,bhmd->bhnm", q, k) * (d_head ** -0.5)
    a = jax.nn.softmax(s, axis=-1)
    o = jnp.einsum("bhnm,bhmd->bhnd", a, v).transpose(0, 2, 1, 3).reshape(B, N, -1)
    return o @ wo + bo


def reference_block(x, context, p, *, n_heads, d_head):
    h = _ref_ln(x, p["norm1_g"], p["norm1_b"])
    x = _ref_attn(h, h, p["attn1_wq"], p["attn1_wk"], p["attn1_wv"],
                  p["attn1_wo"], p["attn1_bo"], n_heads, d_head) + x
    h = _ref_ln(x, p["norm2_g"], p["norm2_b"])
    ctx = h if context is None else context
    x = _ref_attn(h, ctx, p["attn2_wq"], p["attn2_wk"], p["attn2_wv"],
                  p["attn2_wo"], p["attn2_bo"], n_heads, d_head) + x
    h = _ref_ln(x, p["norm3_g"], p["norm3_b"])
    proj = h @ p["ff_w1"] + p["ff_b1"]
    inner = proj.shape[-1] // 2
    gate = proj[..., inner:]
    ff = (proj[..., :inner] * (0.5 * gate * (1.0 + jax.lax.erf(gate * 2.0 ** -0.5)))
          ) @ p["ff_w2"] + p["ff_b2"]
    return ff + x


# ----------------------------------------------------------------------------
def init_params(key, dim, n_heads, d_head):
    inner = n_heads * d_head
    ff_inner = dim * 4
    keys = jax.random.split(key, 14)
    s = 0.05

    def w(k, shape):
        return (s * jax.random.normal(k, shape)).astype(jnp.float32)

    return {
        "attn1_wq": w(keys[0], (dim, inner)),
        "attn1_wk": w(keys[1], (dim, inner)),
        "attn1_wv": w(keys[2], (dim, inner)),
        "attn1_wo": w(keys[3], (inner, dim)),
        "attn1_bo": w(keys[4], (1, dim)),
        "attn2_wq": w(keys[5], (dim, inner)),
        "attn2_wk": w(keys[6], (dim, inner)),
        "attn2_wv": w(keys[7], (dim, inner)),
        "attn2_wo": w(keys[8], (inner, dim)),
        "attn2_bo": w(keys[9], (1, dim)),
        "ff_w1": w(keys[10], (dim, 2 * ff_inner)),
        "ff_b1": w(keys[11], (1, 2 * ff_inner)),
        "ff_w2": w(keys[12], (ff_inner, dim)),
        "ff_b2": w(keys[13], (1, dim)),
        "norm1_g": jnp.ones((1, dim), jnp.float32),
        "norm1_b": jnp.zeros((1, dim), jnp.float32),
        "norm2_g": jnp.ones((1, dim), jnp.float32),
        "norm2_b": jnp.zeros((1, dim), jnp.float32),
        "norm3_g": jnp.ones((1, dim), jnp.float32),
        "norm3_b": jnp.zeros((1, dim), jnp.float32),
    }


if __name__ == "__main__":
    master_key = jax.random.PRNGKey(0)

    def run_case(B, N, M, dim, n_heads, d_head, cfg, key, tag):
        kx, kc, kp = jax.random.split(key, 3)
        x = jax.random.normal(kx, (B, N, dim), dtype=jnp.float32)
        context = jax.random.normal(kc, (B, M, dim), dtype=jnp.float32)
        params = init_params(kp, dim, n_heads, d_head)
        pp = prepare_params(params, d_head=d_head)

        # self path (context=None -> attn2 falls back to self-attention)
        out = jax.block_until_ready(
            basic_transformer_block(x, None, pp, n_heads=n_heads,
                                    d_head=d_head, cfg=cfg))
        ref = reference_block(x, None, params, n_heads=n_heads, d_head=d_head)
        assert out.shape == x.shape and out.dtype == x.dtype
        assert bool(jnp.allclose(out, ref, atol=5e-2, rtol=5e-2)), \
            f"{tag}: self-path mismatch"

        # cross-attention path with an explicit context
        out2 = jax.block_until_ready(
            basic_transformer_block(x, context, pp, n_heads=n_heads,
                                    d_head=d_head, cfg=cfg))
        ref2 = reference_block(x, context, params, n_heads=n_heads, d_head=d_head)
        assert bool(jnp.allclose(out2, ref2, atol=5e-2, rtol=5e-2)), \
            f"{tag}: cross-path mismatch"

    # Case A: small shapes, single-tile path, per-chip default config.
    run_case(B=2, N=8, M=8, dim=32, n_heads=4, d_head=8,
             cfg=chip_config(), key=jax.random.fold_in(master_key, 0),
             tag="caseA")

    # Case B: forced small tiles -> exercises multi-tile online softmax,
    # kv padding mask, query padding, and FF hidden-dim accumulation.
    small_cfg = dict(block_q=16, block_kv=16, block_f=128,
                     vmem_bytes=32 * 1024 * 1024)
    run_case(B=2, N=40, M=24, dim=64, n_heads=2, d_head=16,
             cfg=small_cfg, key=jax.random.fold_in(master_key, 1),
             tag="caseB")

    print("KERNEL_OK")
</pallas_src>

<mosaic_0001>
module attributes {stable_mosaic.version = 11 : i64} {
  func.func @_probe_kernel(%arg0: i32, %arg1: memref<8x128xf32, #tpu.memory_space<vmem>>, %arg2: memref<8x128xf32, #tpu.memory_space<vmem>>) attributes {dimension_semantics = [#tpu.dimension_semantics<arbitrary>], iteration_bounds = array<i64: 1>, scalar_prefetch = 0 : i64, scratch_operands = 0 : i64, tpu.core_type = #tpu.core_type<tc>, window_params = [{pipeline_mode = #tpu.pipeline_mode<synchronous>, transform_indices = @transform_0, window_bounds = array<i64: 8, 128>}, {pipeline_mode = #tpu.pipeline_mode<synchronous>, transform_indices = @transform_1, window_bounds = array<i64: 8, 128>}]} {
    %c0 = arith.constant 0 : index
    %c0_0 = arith.constant 0 : index
    %0 = vector.load %arg1[%c0, %c0_0] : memref<8x128xf32, #tpu.memory_space<vmem>>, vector<8x128xf32>
    %c0_1 = arith.constant 0 : index
    %c0_2 = arith.constant 0 : index
    %1 = vector.load %arg2[%c0_1, %c0_2] : memref<8x128xf32, #tpu.memory_space<vmem>>, vector<8x128xf32>
    tpu.vector_store %arg2[%c0_1, %c0_2], %0 {strides = array<i32>} : memref<8x128xf32, #tpu.memory_space<vmem>>, vector<8x128xf32>,
    return
  }
  func.func @transform_0(%arg0: i32) -> (i32, i32) {
    %c0_i32 = arith.constant 0 : i32
    %c0_i32_0 = arith.constant 0 : i32
    %c0_i32_1 = arith.constant 0 : i32
    return %c0_i32, %c0_i32_0 : i32, i32
  }
  func.func @transform_1(%arg0: i32) -> (i32, i32) {
    %c0_i32 = arith.constant 0 : i32
    %c0_i32_0 = arith.constant 0 : i32
    %c0_i32_1 = arith.constant 0 : i32
    return %c0_i32, %c0_i32_0 : i32, i32
  }
}

module attributes {stable_mosaic.version = 11 : i64} {
  func.func @kv_proj_kernel(%arg0: i32, %arg1: i32, %arg2: memref<1x8x32xf32, #tpu.memory_space<vmem>>, %arg3: memref<1x32xf32, #tpu.memory_space<vmem>>, %arg4: memref<1x32xf32, #tpu.memory_space<vmem>>, %arg5: memref<32x64xbf16, #tpu.memory_space<vmem>>, %arg6: memref<1x4x8x8xbf16, #tpu.memory_space<vmem>>, %arg7: memref<1x4x8x8xbf16, #tpu.memory_space<vmem>>) attributes {dimension_semantics = [#tpu.dimension_semantics<parallel>, #tpu.dimension_semantics<parallel>], iteration_bounds = array<i64: 2, 1>, scalar_prefetch = 0 : i64, scratch_operands = 0 : i64, tpu.core_type = #tpu.core_type<tc>, window_params = [{transform_indices = @transform_0, window_bounds = array<i64: 1, 8, 32>}, {pipeline_mode = #tpu.pipeline_mode<synchronous>, transform_indices = @transform_1, window_bounds = array<i64: 1, 32>}, {pipeline_mode = #tpu.pipeline_mode<synchronous>, transform_indices = @transform_2, window_bounds = array<i64: 1, 32>}, {pipeline_mode = #tpu.pipeline_mode<synchronous>, transform_indices = @transform_3, window_bounds = array<i64: 32, 64>}, {transform_indices = @transform_4, window_bounds = array<i64: 1, 4, 8, 8>}, {transform_indices = @transform_5, window_bounds = array<i64: 1, 4, 8, 8>}]} {
    %c0 = arith.constant 0 : index
    %c0_0 = arith.constant 0 : index
    %c0_1 = arith.constant 0 : index
    %0 = vector.load %arg2[%c0, %c0_0, %c0_1] : memref<1x8x32xf32, #tpu.memory_space<vmem>>, vector<1x8x32xf32>
    %1 = vector.shape_cast %0 : vector<1x8x32xf32> to vector<8x32xf32>
    %c0_2 = arith.constant 0 : index
    %c0_3 = arith.constant 0 : index
    %2 = vector.load %arg3[%c0_2, %c0_3] : memref<1x32xf32, #tpu.memory_space<vmem>>, vector<1x32xf32>
    %c0_4 = arith.constant 0 : index
    %c0_5 = arith.constant 0 : index
    %3 = vector.load %arg4[%c0_4, %c0_5] : memref<1x32xf32, #tpu.memory_space<vmem>>, vector<1x32xf32>
    %cst = arith.constant dense<0.000000e+00> : vector<8xf32>
    %4 = vector.multi_reduction <add>, %1, %cst [1] : vector<8x32xf32> to vector<8xf32>
    %5 = vector.shape_cast %4 : vector<8xf32> to vector<8x1xf32>
    %cst_6 = arith.constant 3.200000e+01 : f32
    %6 = vector.broadcast %cst_6 : f32 to vector<8x1xf32>
    %7 = arith.divf %5, %6 : vector<8x1xf32>
    %8 = vector.broadcast %7 : vector<8x1xf32> to vector<8x32xf32>
    %9 = arith.subf %1, %8 : vector<8x32xf32>
    %10 = arith.mulf %9, %9 : vector<8x32xf32>
    %cst_7 = arith.constant dense<0.000000e+00> : vector<8xf32>
    %11 = vector.multi_reduction <add>, %10, %cst_7 [1] : vector<8x32xf32> to vector<8xf32>
    %12 = vector.shape_cast %11 : vector<8xf32> to vector<8x1xf32>
    %cst_8 = arith.constant 3.200000e+01 : f32
    %13 = vector.broadcast %cst_8 : f32 to vector<8x1xf32>
    %14 = arith.divf %12, %13 : vector<8x1xf32>
    %cst_9 = arith.constant 9.99999974E-6 : f32
    %15 = vector.broadcast %cst_9 : f32 to vector<8x1xf32>
    %16 = arith.addf %14, %15 : vector<8x1xf32>
    %17 = math.rsqrt %16 : vector<8x1xf32>
    %18 = vector.broadcast %17 : vector<8x1xf32> to vector<8x32xf32>
    %19 = arith.mulf %9, %18 : vector<8x32xf32>
    %20 = vector.broadcast %2 : vector<1x32xf32> to vector<8x32xf32>
    %21 = arith.mulf %19, %20 : vector<8x32xf32>
    %22 = vector.broadcast %3 : vector<1x32xf32> to vector<8x32xf32>
    %23 = arith.addf %21, %22 : vector<8x32xf32>
    %24 = arith.truncf %23 : vector<8x32xf32> to vector<8x32xbf16>
    %c0_10 = arith.constant 0 : index
    %c0_11 = arith.constant 0 : index
    %25 = vector.load %arg5[%c0_10, %c0_11] : memref<32x64xbf16, #tpu.memory_space<vmem>>, vector<32x64xbf16>
    %cst_12 = arith.constant dense<0.000000e+00> : vector<8x64xf32>
    %26 = tpu.matmul %24, %25, %cst_12 {dimension_numbers = #tpu.dot_dimension_numbers<[1], [0], [0], [1], [0, 0, 1, 1], [], []>} : vector<8x32xbf16>, vector<32x64xbf16>, vector<8x64xf32> -> vector<8x64xf32>
    %27 = vector.extract_strided_slice %26 {offsets = [0, 0], sizes = [8, 32], strides = [1, 1]} : vector<8x64xf32> to vector<8x32xf32>
    %28 = vector.shape_cast %27 : vector<8x32xf32> to vector<8x4x8xf32>
    %29 = tpu.transpose %28, [1, 0, 2] : vector<8x4x8xf32> -> vector<4x8x8xf32>
    %30 = vector.extract_strided_slice %26 {offsets = [0, 32], sizes = [8, 32], strides = [1, 1]} : vector<8x64xf32> to vector<8x32xf32>
    %31 = vector.shape_cast %30 : vector<8x32xf32> to vector<8x4x8xf32>
    %32 = tpu.transpose %31, [1, 0, 2] : vector<8x4x8xf32> -> vector<4x8x8xf32>
    %33 = arith.truncf %29 : vector<4x8x8xf32> to vector<4x8x8xbf16>
    %c0_13 = arith.constant 0 : index
    %c0_14 = arith.constant 0 : index
    %c0_15 = arith.constant 0 : index
    %c0_16 = arith.constant 0 : index
    %34 = vector.load %arg6[%c0_13, %c0_14, %c0_15, %c0_16] : memref<1x4x8x8xbf16, #tpu.memory_space<vmem>>, vector<1x4x8x8xbf16>
    %35 = vector.shape_cast %34 : vector<1x4x8x8xbf16> to vector<4x8x8xbf16>
    %36 = vector.shape_cast %33 : vector<4x8x8xbf16> to vector<1x4x8x8xbf16>
    tpu.vector_store %arg6[%c0_13, %c0_14, %c0_15, %c0_16], %36 {strides = array<i32>} : memref<1x4x8x8xbf16, #tpu.memory_space<vmem>>, vector<1x4x8x8xbf16>,
    %37 = arith.truncf %32 : vector<4x8x8xf32> to vector<4x8x8xbf16>
    %c0_17 = arith.constant 0 : index
    %c0_18 = arith.constant 0 : index
    %c0_19 = arith.constant 0 : index
    %c0_20 = arith.constant 0 : index
    %38 = vector.load %arg7[%c0_17, %c0_18, %c0_19, %c0_20] : memref<1x4x8x8xbf16, #tpu.memory_space<vmem>>, vector<1x4x8x8xbf16>
    %39 = vector.shape_cast %38 : vector<1x4x8x8xbf16> to vector<4x8x8xbf16>
    %40 = vector.shape_cast %37 : vector<4x8x8xbf16> to vector<1x4x8x8xbf16>
    tpu.vector_store %arg7[%c0_17, %c0_18, %c0_19, %c0_20], %40 {strides = array<i32>} : memref<1x4x8x8xbf16, #tpu.memory_space<vmem>>, vector<1x4x8x8xbf16>,
    return
  }
  func.func @transform_0(%arg0: i32, %arg1: i32) -> (i32, i32, i32) {
    %c0_i32 = arith.constant 0 : i32
    %c0_i32_0 = arith.constant 0 : i32
    return %arg0, %arg1, %c0_i32 : i32, i32, i32
  }
  func.func @transform_1(%arg0: i32, %arg1: i32) -> (i32, i32) {
    %c0_i32 = arith.constant 0 : i32
    %c0_i32_0 = arith.constant 0 : i32
    %c0_i32_1 = arith.constant 0 : i32
    return %c0_i32, %c0_i32_0 : i32, i32
  }
  func.func @transform_2(%arg0: i32, %arg1: i32) -> (i32, i32) {
    %c0_i32 = arith.constant 0 : i32
    %c0_i32_0 = arith.constant 0 : i32
    %c0_i32_1 = arith.constant 0 : i32
    return %c0_i32, %c0_i32_0 : i32, i32
  }
  func.func @transform_3(%arg0: i32, %arg1: i32) -> (i32, i32) {
    %c0_i32 = arith.constant 0 : i32
    %c0_i32_0 = arith.constant 0 : i32
    %c0_i32_1 = arith.constant 0 : i32
    return %c0_i32, %c0_i32_0 : i32, i32
  }
  func.func @transform_4(%arg0: i32, %arg1: i32) -> (i32, i32, i32, i32) {
    %c0_i32 = arith.constant 0 : i32
    %c0_i32_0 = arith.constant 0 : i32
    %c0_i32_1 = arith.constant 0 : i32
    return %arg0, %c0_i32, %arg1, %c0_i32_0 : i32, i32, i32, i32
  }
  func.func @transform_5(%arg0: i32, %arg1: i32) -> (i32, i32, i32, i32) {
    %c0_i32 = arith.constant 0 : i32
    %c0_i32_0 = arith.constant 0 : i32
    %c0_i32_1 = arith.constant 0 : i32
    return %arg0, %c0_i32, %arg1, %c0_i32_0 : i32, i32, i32, i32
  }
}

</mosaic_0001>

<bundles_post_ra>
// kernel: tpu_custom_call.1
= control target key start
LH: loop header
LB: loop body
LE: loop exit
PB: predicated region body
PF: predicated region fallthrough
CT: control target
= control target key end

     0   :  { %6 = vsyncpa [#allocation3], 0  ;;  %s114_s0 = inlined_call_operand.hbm [shape: f32[8,128], index: 0, kind: input, shape index: {}]   ;;  %s115_s1 = inlined_call_operand.hbm [shape: f32[8,128], index: 1, kind: output, shape index: {}]  }
   0x1   :  { %7 = vsyncpa [#allocation4], 0  ;;  %s13_s8 = sshll.u32 %s114_s0, 4  ;;  %s96_s9 = smov [#allocation2]   ;;  %s14_s8 = int_to_ptr.hbm [resolvable:$true] %s13_s8 }
   0x2   :  { %s15_s10 = sshll.u32 %s96_s9, 4  ;;  %s16_s10 = int_to_ptr.vmem [resolvable:$true] %s15_s10 }
   0x3   :  { %18 = dma.hbm_to_vmem [thread:$0]  %s14_s8, 128, %s16_s10, [#allocation3]  }
   0x4   :  { %92 = dma.done.wait [#allocation3], 128  }
   0x5   :  { %93 = vsyncadd [#allocation3], 4294967168  ;;  %s97_s11 = smov [#allocation5]   ;;  %s32_s15 = sshll.u32 %s115_s1, 4  ;;  %v23_v0 = vld [vmem:[#allocation2] sm:$0xff]  ;;  %s33_s15 = int_to_ptr.hbm [resolvable:$true] %s32_s15 }
   0x6   :  { %s30_s12 = sshll.u32 %s97_s11, 4  ;;  %24 = vst [vmem:[#allocation5] sm:$0xff] %v23_v0  ;;  %s31_s12 = int_to_ptr.vmem [resolvable:$true] %s30_s12 }
   0x7   :  { %35 = dma.vmem_to_hbm [thread:$0]  %s31_s12, 128, %s33_s15, [#allocation4]  }
   0x8   :  { %94 = dma.done.wait [#allocation4], 128  }
   0x9   :  { %95 = vsyncadd [#allocation4], 4294967168 }
   0xa   :  { %40 = vsyncpa [#allocation3], 1 }
   0xb   :  { %41 = vsyncpa [#allocation4], 1 }

// kernel: tpu_custom_call.1
= control target key start
LH: loop header
LB: loop body
LE: loop exit
PB: predicated region body
PF: predicated region fallthrough
CT: control target
= control target key end

     0   :  { %11 = vsyncpa [#allocation3], 0  ;;  %s1492_s0 = inlined_call_operand.hbm [shape: f32[2,8,32], index: 0, kind: input, shape index: {}]   ;;  %s1493_s1 = inlined_call_operand.hbm [shape: f32[1,32], index: 1, kind: input, shape index: {}]   ;;  %s1494_s2 = inlined_call_operand.vmem [shape: f32[1,32], index: 2, kind: input, shape index: {}]   ;;  %s1495_s3 = inlined_call_operand.hbm [shape: bf16[32,64], index: 3, kind: input, shape index: {}]   ;;  %s1496_s4 = inlined_call_operand.hbm [shape: bf16[2,4,8,8], index: 4, kind: output, shape index: {0}]   ;;  %s1497_s5 = inlined_call_operand.hbm [shape: bf16[2,4,8,8], index: 5, kind: output, shape index: {1}]  }
   0x1   :  { %13 = vsyncpa [#allocation3 + $0x1], 0 }
   0x2   :  { %14 = vsyncpa [#allocation6], 0 }
   0x3   :  { %15 = vsyncpa [#allocation4], 0 }
   0x4   :  { %17 = vsyncpa [#allocation4 + $0x1], 0 }
   0x5   :  { %18 = vsyncpa [#allocation10], 0 }
   0x6   :  { %20 = vsyncpa [#allocation10 + $0x1], 0  ;;  %s1219_s18 = smov 0   ;;  %s1221_s19 = smov 0  }
   0x7   :  { %s1223_s20 = smov 0   ;;  %s1225_s21 = smov 0  }
   0x8   :  { %s1227_s22 = smov 0   ;;  %s1229_s23 = smov 0  }
   0x9 LB: > { %s816_s24 = sadd.s32 4294967295, %s1174_s23   ;;  %s817_s25 = sadd.s32 4294967294, %s1174_s23   ;;  %s1174_s23 = sphi %s1229_s23, %s26_s23   ;;  %s1170_s22 = sphi %s1227_s22, %s1507_s22   ;;  %s1166_s21 = sphi %s1225_s21, %s1506_s21   ;;  %s1162_s20 = sphi %s1223_s20, %s1505_s20   ;;  %s1158_s19 = sphi %s1221_s19, %s1504_s19   ;;  %s1154_s18 = sphi %s1219_s18, %s1503_s18  }
   0xa   : > { %p60_p0 = scmp.ne.s32.totalorder %s1158_s19, %s1154_s18  ;;  %p1255_p1 = scmp.eq.s32.totalorder %s816_s24, 0 }
   0xb   : > { %p155_p2 = scmp.eq.s32.totalorder %s817_s25, 1  ;;  %p818_p4 = scmp.ge.s32.totalorder %s1174_s23, 1 }
   0xc   : > { %p1261_p3 = por %p1255_p1, %p60_p0  ;;  %p190_p6 = scmp.lt.s32.totalorder %s1174_s23, 3 }
   0xd   : > { %p1266_p5 = por %p155_p2, %p60_p0  ;;  %s202_s6 = sshll.u32 %s1493_s1, 4  ;;  %s203_s6 = int_to_ptr.hbm [resolvable:$true] %s202_s6 }
   0xe   : > { %p1274_p7 = pnand %p818_p4, %p190_p6  ;;  %p821_p8 = scmp.ge.s32.totalorder %s1174_s23, 2 }
   0xf   : > { %s1176_s8 = smov [#allocation5]   ;;  %s216_s12 = sshll.u32 %s1495_s3, 4  ;;  %s217_s12 = int_to_ptr.hbm [resolvable:$true] %s216_s12 }
  0x10   : > { %p865_p9 = pneg %p1274_p7  ;;  %s204_s9 = sshll.u32 %s1176_s8, 4  ;;  %s205_s9 = int_to_ptr.vmem [resolvable:$true] %s204_s9 }
  0x11   : > { %s1177_s13 = smov [#allocation7]   ;;  %s1178_s15 = smov 64  }
  0x12   : > { %p866_p10 = pnand %p865_p9, %p1255_p1  ;;  %s218_s14 = sshll.u32 %s1177_s13, 4  ;;  %s219_s14 = int_to_ptr.vmem [resolvable:$true] %s218_s14 }
  0x13   : > { %s1179_s16 = smov 4   ;;  %p149_p11 = scmp.eq.s32.totalorder %s816_s24, 1 }
  0x14   : > { %868 = dma.hbm_to_vmem [thread:$0]  (!%p866_p10), %s203_s6, 16, %s205_s9, [#allocation6]  }
  0x15   : > { %871 = dma.hbm_to_vmem [thread:$0]  (!%p866_p10), %s217_s12, 256, %s219_s14, [#allocation6], %s1178_s15, %s1178_s15, %s1179_s16  }
  0x16   : > { %s38_s17 = sadd.s32 1, %s1170_s22  ;;  %s47_s25 = sadd.s32 1, %s1162_s20 }
  0x17   : > { %p40_p12 = scmp.ge.s32.totalorder %s38_s17, 2  ;;  %p54_p13 = scmp.ne.s32.totalorder %s1162_s20, %s1158_s19 }
  0x18   : > { %p55_p0 = scmp.eq.s32.totalorder %s1174_s23, 0  ;;  %p885_p4 = scmp.lt.s32.totalorder %s1174_s23, 2 }
  0x19   : > { %s1509_s17 = smov (%p40_p12, %s38_s17), 0  ;;  %p1295_p2 = por %p149_p11, %p54_p13 }
  0x1a   : > { %s42_s30 = ssub.s32 %s1170_s22, %s1509_s17  ;;  %s232_s6 = sand.u32 1, %s1162_s20  }
  0x1b   : > { %p45_p6 = scmp.eq.s32.totalorder %s42_s30, 0  ;;  %p56_p9 = por %p55_p0, %p54_p13 }
  0x1c   : > { %s822_s8 = sshll.u32 %s232_s6, 3  ;;  %s823_s24 = sshll.u32 %s1170_s22, 3 }
  0x1d   : > { %s1305_s9 = scalar_select %p45_p6, %s1162_s20, %s47_s25  }
  0x1e   : > { %s241_s12 = scalar_lea.hbm %s1492_s0, %s823_s24  ;;  %s236_s14 = scalar_lea.vmem [#allocation2], %s822_s8 }
  0x1f   : > { %s243_s13 = sshll.u32 %s241_s12, 4  ;;  %s245_s15 = sshll.u32 %s236_s14, 4  ;;  %s244_s13 = int_to_ptr.hbm [resolvable:$true] %s243_s13  ;;  %s246_s15 = int_to_ptr.vmem [resolvable:$true] %s245_s15 }
  0x20   : > { %p873_p10 = pnand %p885_p4, %p56_p9  ;;  %s233_s16 = scalar_lea.sflag [#allocation3], %s232_s6 }
  0x21   : > { %254 = sbr.rel (%p1274_p7) target bundleno = 710 (0x2c6), region = 36  ;;  %s1315_s25 = sand.u32 (!%p1274_p7), 1, %s1158_s19  }
  0x22   : > { %875 = dma.hbm_to_vmem [thread:$0]  (!%p873_p10), %s244_s13, 128, %s246_s15, %s233_s16  }
  0x23   : > { %s825_s30 = sshll.u32 (!%p1274_p7), %s1315_s25, 3  ;;  %s257_s24 = scalar_lea.sflag (!%p1274_p7), [#allocation3], %s1315_s25 }
  0x24   : > { %s260_s10 = scalar_lea.vmem (!%p1274_p7), [#allocation2], %s825_s30 }
  0x26   : > { %1137 = dma.done.wait (%p1261_p3), %s257_s24, 128  }
  0x27   : > { %1139 = vsyncadd (%p1261_p3), %s257_s24, 4294967168 }
  0x28   : > { %1141 = dma.done.wait (%p1255_p1), [#allocation6], 272  }
  0x29   : > { %1143 = vsyncadd (%p1255_p1), [#allocation6], 4294967024  ;;  %vm307_vm0 = vcmask 261120   ;;  %v304_v0 = vld [vmem:[%s260_s10] sm:$0xff]  ;;  %v1180_v2 = vmov 32.0   ;;  %v847_v15 = vld [vmem:[#allocation7] sm:$0xff] }
  0x2a   : > { %v308_v1 = vsel %vm307_vm0, %v304_v0, 0.0  ;;  %962 = vrcp.f32 %v1180_v2  ;;  %v848_v14 = vld [vmem:[#allocation7 + $0x8] sm:$0xff]  ;;  %v960_v25 = vld [vmem:[#allocation5] ss:$0 sm:$0xff]  ;;  %s1181_s7 = smov 104   ;;  %s1182_s6 = smov 112  }
  0x2b   : > { %309 = vadd.xlane.f32.xlu0 %v308_v1  ;;  %371 = vmatpush.bf16.msra.mxu0 %v848_v14  ;;  %v961_v28 = vld [vmem:[%s1494_s2] ss:$0 sm:$0xff]  ;;  %s1183_s8 = smov 120   ;;  %v1184_v34 = vmov 1983009808   ;;  %vm389_vm5 = vcmask 1047556  }
  0x2c   : > { %v394_v35 = vunpack.c.l.s4 %v1184_v34  ;;  %s1185_s11 = smov 96   ;;  %v1186_v44 = vmov 1934713408   ;;  %s849_s12 = sshll.u32 %s1166_s21, 4  ;;  %vm625_vm6 = vcmask 60416  }
  0x2d   : > { %v418_v45 = vunpack.c.l.s4 %v1186_v44  ;;  %s828_s13 = sshll.u32 %s1315_s25, 4  ;;  %s656_s16 = scalar_lea.hbm %s1496_s4, %s849_s12 }
  0x2e   : > { %v1334_v42 = vunpack.c.0.s8 %v394_v35  ;;  %s295_s30 = scalar_lea.vmem [#allocation8], %s828_s13  ;;  %s659_s10 = sshll.u32 %s656_s16, 4  ;;  %s660_s10 = int_to_ptr.hbm [resolvable:$true] %s659_s10 }
  0x2f   : > { %372 = vmatpush.bf16.msra.mxu0 %v847_v15  ;;  %v1339_v50 = vunpack.c.0.s8 %v418_v45  ;;  %s657_s24 = sshll.u32 %s295_s30, 4  ;;  %s639_s26 = scalar_lea.sflag [#allocation4], %s1315_s25  ;;  %s658_s24 = int_to_ptr.vmem [resolvable:$true] %s657_s24 }
  0x30   : > { %v963_v3 = vpop.eup %962  ;;  %s1070_s27 = sshra.s32 %s660_s10, 4  ;;  %s1071_s27 = int_to_ptr.hbm [resolvable:$true] %s1070_s27 }
  0x31   : > { %v312_v4 = vmul.f32 32.0, %v963_v3  ;;  %vm316_vm1 = vweird.f32 %v963_v3  ;;  %p1077_p11 = scmp.lt.s32.totalorder %s1071_s27, %s1496_s4 }
  0x33   : > { %v313_v5 = vsub.f32 1.0, %v312_v4 }
  0x35   : > { %v314_v6 = vmul.f32 %v963_v3, %v313_v5 }
  0x37   : > { %v315_v7 = vadd.f32 %v963_v3, %v314_v6 }
  0x39   : > { %v317_v8 = vsel %vm316_vm1, %v963_v3, %v315_v7 }
  0x9e   : > { %v310_v9 = vpop.xlane.xlu0 %309 }
  0x9f   : > { %v318_v10 = vmul.f32 %v317_v8, %v310_v9 }
  0xa1   : > { %v319_v11 = vsub.f32 %v304_v0, %v318_v10 }
  0xa3   : > { %v320_v12 = vmul.f32 %v319_v11, %v319_v11 }
  0xa5   : > { %v321_v13 = vsel %vm307_vm0, %v320_v12, 0.0 }
  0xa6   : > { %322 = vadd.xlane.f32.xlu0 %v321_v13 }
 0x119   : > { %v323_v16 = vpop.xlane.xlu0 %322 }
 0x11a   : > { %v324_v17 = vmul.f32 %v323_v16, %v317_v8 }
 0x11c   : > { %v325_v18 = vadd.f32 1e-05, %v324_v17 }
 0x11e   : > { %964 = vrsqrt.f32 %v325_v18  ;;  %vm332_vm3 = vweird.f32 %v325_v18 }
 0x124   : > { %v965_v19 = vpop.eup %964 }
 0x125   : > { %v327_v20 = vmul.f32 %v965_v19, %v325_v18  ;;  %vm333_vm2 = vweird.f32 %v965_v19 }
 0x126   : > { %vm334_vm4 = vmor %vm332_vm3, %vm333_vm2 }
 0x127   : > { %v328_v21 = vmul.f32 %v965_v19, %v327_v20 }
 0x129   : > { %v329_v22 = vmul.f32 0.5, %v328_v21 }
 0x12b   : > { %v330_v23 = vsub.f32 1.5, %v329_v22 }
 0x12d   : > { %v331_v24 = vmul.f32 %v965_v19, %v330_v23 }
 0x12f   : > { %v335_v26 = vsel %vm334_vm4, %v965_v19, %v331_v24 }
 0x130   : > { %v336_v27 = vmul.f32 %v335_v26, %v319_v11 }
 0x132   : > { %v340_v29 = vmul.f32 %v960_v25, %v336_v27 }
 0x134   : > { %v344_v30 = vadd.f32 %v961_v28, %v340_v29 }
 0x136   : > { %v345_v31 = vpack.c.bf16 %v344_v30, %v344_v30 }
 0x138   : > { %838 = vmatmul.msk.bf16.vlgmr.msra.gmra.mxu0 %vm307_vm0, %v345_v31 }
 0x1b5   : > { %v374_v32 = vpop.f32.mrf.mxu0 }
 0x1b6   : > { %385 = vrot.lane.b32.xlu2 %v374_v32, %s1181_s7  ;;  %382 = vrot.lane.b32.xlu1 %v374_v32, %s1182_s6  ;;  %v391_v40 = vrot.slane %v374_v32, 4  ;;  %s1072_s7 = scalar_lea.hbm %s1071_s27, 16 }
 0x1b7   : > { %p1073_p1 = scmp.ne.s32.totalorder %s1071_s27, %s1072_s7 }
 0x1b9   : > { %p1074_p3 = pnand %p1073_p1, %p1295_p2 }
 0x1bb   : > { %p1075_p7 = pneg %p1074_p3 }
 0x1bd   : > { %v376_v33 = vpop.f32.mrf.mxu0 }
 0x1be   : > { %379 = vrot.lane.b32.xlu1 %v374_v32, %s1183_s8 }
 0x210   : > { %v386_v41 = vpop.permute.xlu2 %385 }
 0x211   : > { %v401_v47 = vrot.slane %v386_v41, 4 }
 0x228   : > { %v383_v36 = vpop.permute.xlu1 %382 }
 0x229   : > { %v388_v37 = vrot.slane %v383_v36, 4  ;;  %v950_v38 = vpack.i.bf16 %v383_v36, %v374_v32  ;;  %v392_v43 = vsel %vm389_vm5, %v383_v36, %v391_v40 }
 0x22a   : > { %v400_v48 = vperm.slane %v392_v43, %v1334_v42 }
 0x22b   : > { %v390_v39 = vsel %vm389_vm5, %v388_v37, %v374_v32  ;;  %951 = vrot.lane.b32.xlu2 %v950_v38, %s1185_s11 }
 0x22c   : > { %v396_v46 = vperm.slane %v390_v39, %v1334_v42  ;;  %v427_v57 = vrot.slane %v400_v48, 4 }
 0x22e   : > { %v415_v54 = vrot.slane %v396_v46, 4 }
 0x230   : > { %v380_v49 = vpop.permute.xlu1 %379 }
 0x231   : > { %v402_v51 = vsel %vm389_vm5, %v401_v47, %v380_v49  ;;  %v403_v52 = vrot.slane %v380_v49, 4  ;;  %v955_v53 = vpack.i.bf16 %v386_v41, %v380_v49 }
 0x232   : > { %v408_v55 = vperm.slane %v402_v51, %v1334_v42 }
 0x233   : > { %v404_v56 = vsel %vm389_vm5, %v386_v41, %v403_v52  ;;  %956 = vrot.lane.b32.xlu0 %v955_v53, %s1185_s11  ;;  %s1076_s11 = scalar_lea.hbm %s1496_s4, 32 }
 0x234   : > { %v412_v58 = vperm.slane %v404_v56, %v1334_v42  ;;  %v413_v59 = vrot.slane %v408_v55, 4  ;;  %v416_v60 = vsel %vm389_vm5, %v408_v55, %v415_v54  ;;  %p1078_p12 = scmp.lt.s32.totalorder %s1076_s11, %s1072_s7 }
 0x235   : > { %v424_v61 = vperm.slane %v416_v60, %v1339_v50 }
 0x236   : > { %v414_v62 = vsel %vm389_vm5, %v413_v59, %v396_v46  ;;  %v425_v63 = vrot.slane %v412_v58, 4  ;;  %v428_v0 = vsel %vm389_vm5, %v412_v58, %v427_v57  ;;  %p1079_p13 = por %p1078_p12, %p1077_p11 }
 0x237   : > { %v420_v1 = vperm.slane %v414_v62, %v1339_v50  ;;  %v439_v2 = vrot.slane %v424_v61, 4  ;;  %v436_v3 = vperm.slane %v428_v0, %v1339_v50 }
 0x238   : > { %v426_v4 = vsel %vm389_vm5, %v425_v63, %v400_v48  ;;  %p1080_p0 = pnand %p1079_p13, %p1075_p7 }
 0x239   : > { %v437_v5 = vrot.slane %v420_v1, 4  ;;  %v440_v6 = vsel %vm389_vm5, 0.0, %v439_v2  ;;  %v445_v7 = vsel %vm389_vm5, %v439_v2, %v420_v1  ;;  %v432_v8 = vperm.slane %v426_v4, %v1339_v50 }
 0x23a   : > { %v449_v9 = vperm.slane %v445_v7, %v1334_v42  ;;  %v450_v10 = vrot.slane %v440_v6, 4  ;;  %v443_v11 = vrot.slane %v436_v3, 4 }
 0x23b   : > { %v438_v12 = vsel %vm389_vm5, 0.0, %v437_v5  ;;  %v441_v13 = vrot.slane %v432_v8, 4 }
 0x23c   : > { %v451_v14 = vsel %vm389_vm5, %v450_v10, %v438_v12  ;;  %v469_v15 = vrot.slane %v449_v9, 4  ;;  %v444_v16 = vsel %vm389_vm5, 0.0, %v443_v11  ;;  %v456_v17 = vsel %vm389_vm5, %v443_v11, %v432_v8 }
 0x23d   : > { %v455_v18 = vperm.slane %v451_v14, %v1334_v42  ;;  %v442_v19 = vsel %vm389_vm5, 0.0, %v441_v13  ;;  %v460_v20 = vperm.slane %v456_v17, %v1334_v42  ;;  %v461_v21 = vrot.slane %v444_v16, 4 }
 0x23f   : > { %v467_v22 = vrot.slane %v455_v18, 4  ;;  %v470_v23 = vsel %vm389_vm5, %v455_v18, %v469_v15  ;;  %v462_v24 = vsel %vm389_vm5, %v461_v21, %v442_v19  ;;  %v481_v25 = vrot.slane %v460_v20, 4 }
 0x240   : > { %v478_v26 = vperm.slane %v470_v23, %v1339_v50  ;;  %v466_v27 = vperm.slane %v462_v24, %v1334_v42 }
 0x241   : > { %v468_v28 = vsel %vm389_vm5, %v467_v22, %v449_v9 }
 0x242   : > { %v474_v29 = vperm.slane %v468_v28, %v1339_v50  ;;  %v497_v30 = vrot.slane %v478_v26, 4  ;;  %v479_v31 = vrot.slane %v466_v27, 4  ;;  %v482_v32 = vsel %vm389_vm5, %v466_v27, %v481_v25 }
 0x243   : > { %v490_v33 = vperm.slane %v482_v32, %v1339_v50 }
 0x244   : > { %v493_v34 = vrot.slane %v474_v29, 4  ;;  %v480_v35 = vsel %vm389_vm5, %v479_v31, %v460_v20 }
 0x245   : > { %v486_v36 = vperm.slane %v480_v35, %v1339_v50  ;;  %v495_v37 = vrot.slane %v490_v33, 4  ;;  %v498_v38 = vsel %vm389_vm5, %v490_v33, %v497_v30 }
 0x246   : > { %v624_v39 = vpack.c.bf16 %v498_v38, %v498_v38 }
 0x247   : > { %v491_v40 = vrot.slane %v486_v36, 4  ;;  %v494_v41 = vsel %vm389_vm5, %v486_v36, %v493_v34  ;;  %v496_v43 = vsel %vm389_vm5, %v495_v37, %v478_v26 }
 0x248   : > { %v622_v44 = vpack.c.bf16 %v494_v41, %v494_v41  ;;  %v623_v45 = vpack.c.bf16 %v496_v43, %v496_v43  ;;  %629 = vst.msk [vmem:[%s295_s30 + $0xc] sm:$0xf] %vm625_vm6, %v624_v39 }
 0x249   : > { %v492_v46 = vsel %vm389_vm5, %v491_v40, %v474_v29 }
 0x24a   : > { %v621_v47 = vpack.c.bf16 %v492_v46, %v492_v46  ;;  %627 = vst.msk [vmem:[%s295_s30 + $0x4] sm:$0xf] %vm625_vm6, %v622_v44 }
 0x24b   : > { %628 = vst.msk [vmem:[%s295_s30 + $0x8] sm:$0xf] %vm625_vm6, %v623_v45 }
 0x24c   : > { %626 = vst.msk [vmem:[%s295_s30] sm:$0xf] %vm625_vm6, %v621_v47 }
 0x24d   : > { %1083 = shalt.err (!%p1080_p0)
}
 0x24e   : > { %s1187_s16 = smov 64   ;;  %s1188_s30 = smov 4  }
 0x24f   : > { %861 = dma.vmem_to_hbm [thread:$0]  (%p1295_p2), %s658_s24, 256, %s660_s10, %s639_s26, %s1187_s16, %s1187_s16, %s1188_s30  }
 0x250   : > { %s674_s26 = scalar_lea.hbm %s1497_s5, %s849_s12  ;;  %s302_s27 = scalar_lea.vmem [#allocation9], %s828_s13 }
 0x251   : > { %s675_s7 = sshll.u32 %s302_s27, 4  ;;  %s677_s6 = sshll.u32 %s674_s26, 4  ;;  %s676_s7 = int_to_ptr.vmem [resolvable:$true] %s675_s7  ;;  %s678_s6 = int_to_ptr.hbm [resolvable:$true] %s677_s6 }
 0x252   : > { %s644_s21 = scalar_lea.sflag [#allocation10], %s1315_s25  ;;  %s1098_s12 = sshra.s32 %s678_s6, 4  ;;  %s1099_s12 = int_to_ptr.hbm [resolvable:$true] %s1098_s12 }
 0x253   : > { %s1100_s13 = scalar_lea.hbm %s1099_s12, 16  ;;  %s1104_s14 = scalar_lea.hbm %s1497_s5, 32 }
 0x254   : > { %p1101_p4 = scmp.ne.s32.totalorder %s1099_s12, %s1100_s13  ;;  %p1105_p10 = scmp.lt.s32.totalorder %s1099_s12, %s1497_s5 }
 0x255   : > { %p1106_p1 = scmp.lt.s32.totalorder %s1104_s14, %s1100_s13 }
 0x256   : > { %p1102_p6 = pnand %p1101_p4, %p1295_p2 }
 0x257   : > { %p1107_p3 = por %p1106_p1, %p1105_p10 }
 0x258   : > { %p1103_p9 = pneg %p1102_p6 }
 0x25a   : > { %p1108_p7 = pnand %p1107_p3, %p1103_p9 }
 0x285   : > { %v952_v48 = vpop.permute.xlu2 %951 }
 0x286   : > { %v954_v49 = vunpack.i.h.bf16 %v952_v48  ;;  %v953_v51 = vunpack.i.l.bf16 %v952_v48 }
 0x288   : > { %v511_v52 = vrot.slane %v954_v49, 4  ;;  %v513_v53 = vrot.slane %v953_v51, 4 }
 0x28a   : > { %v512_v54 = vsel %vm389_vm5, %v511_v52, %v953_v51  ;;  %v514_v55 = vsel %vm389_vm5, %v954_v49, %v513_v53 }
 0x28b   : > { %v518_v59 = vperm.slane %v512_v54, %v1334_v42  ;;  %v522_v60 = vperm.slane %v514_v55, %v1334_v42 }
 0x28d   : > { %v537_v1 = vrot.slane %v518_v59, 4  ;;  %v549_v2 = vrot.slane %v522_v60, 4 }
 0x2a5   : > { %v957_v56 = vpop.permute.xlu0 %956 }
 0x2a6   : > { %v959_v57 = vunpack.i.h.bf16 %v957_v56  ;;  %v958_v58 = vunpack.i.l.bf16 %v957_v56 }
 0x2a8   : > { %v523_v61 = vrot.slane %v959_v57, 4  ;;  %v525_v62 = vrot.slane %v958_v58, 4 }
 0x2aa   : > { %v524_v63 = vsel %vm389_vm5, %v523_v61, %v958_v58  ;;  %v526_v0 = vsel %vm389_vm5, %v959_v57, %v525_v62 }
 0x2ab   : > { %v530_v3 = vperm.slane %v524_v63, %v1334_v42  ;;  %v534_v4 = vperm.slane %v526_v0, %v1334_v42 }
 0x2ad   : > { %v535_v5 = vrot.slane %v530_v3, 4  ;;  %v538_v6 = vsel %vm389_vm5, %v530_v3, %v537_v1  ;;  %v547_v7 = vrot.slane %v534_v4, 4  ;;  %v550_v8 = vsel %vm389_vm5, %v534_v4, %v549_v2 }
 0x2ae   : > { %v546_v9 = vperm.slane %v538_v6, %v1339_v50  ;;  %v558_v10 = vperm.slane %v550_v8, %v1339_v50 }
 0x2af   : > { %v536_v11 = vsel %vm389_vm5, %v535_v5, %v518_v59  ;;  %v548_v12 = vsel %vm389_vm5, %v547_v7, %v522_v60 }
 0x2b0   : > { %v542_v13 = vperm.slane %v536_v11, %v1339_v50  ;;  %v554_v14 = vperm.slane %v548_v12, %v1339_v50  ;;  %v561_v15 = vrot.slane %v546_v9, 4  ;;  %v565_v16 = vrot.slane %v558_v10, 4 }
 0x2b2   : > { %v559_v17 = vrot.slane %v542_v13, 4  ;;  %v562_v18 = vsel %vm389_vm5, 0.0, %v561_v15  ;;  %v563_v19 = vrot.slane %v554_v14, 4  ;;  %v566_v20 = vsel %vm389_vm5, 0.0, %v565_v16 }
 0x2b3   : > { %v567_v21 = vsel %vm389_vm5, %v561_v15, %v542_v13  ;;  %v572_v22 = vrot.slane %v562_v18, 4  ;;  %v578_v23 = vsel %vm389_vm5, %v565_v16, %v554_v14  ;;  %v583_v24 = vrot.slane %v566_v20, 4 }
 0x2b4   : > { %v560_v25 = vsel %vm389_vm5, 0.0, %v559_v17  ;;  %v564_v26 = vsel %vm389_vm5, 0.0, %v563_v19  ;;  %v571_v27 = vperm.slane %v567_v21, %v1334_v42  ;;  %v582_v28 = vperm.slane %v578_v23, %v1334_v42 }
 0x2b5   : > { %v573_v29 = vsel %vm389_vm5, %v572_v22, %v560_v25  ;;  %v584_v30 = vsel %vm389_vm5, %v583_v24, %v564_v26 }
 0x2b6   : > { %v577_v31 = vperm.slane %v573_v29, %v1334_v42  ;;  %v588_v32 = vperm.slane %v584_v30, %v1334_v42  ;;  %v591_v33 = vrot.slane %v571_v27, 4  ;;  %v603_v34 = vrot.slane %v582_v28, 4 }
 0x2b8   : > { %v589_v35 = vrot.slane %v577_v31, 4  ;;  %v592_v36 = vsel %vm389_vm5, %v577_v31, %v591_v33  ;;  %v601_v37 = vrot.slane %v588_v32, 4  ;;  %v604_v38 = vsel %vm389_vm5, %v588_v32, %v603_v34 }
 0x2b9   : > { %v600_v39 = vperm.slane %v592_v36, %v1339_v50  ;;  %v612_v40 = vperm.slane %v604_v38, %v1339_v50 }
 0x2ba   : > { %v590_v41 = vsel %vm389_vm5, %v589_v35, %v571_v27  ;;  %v602_v43 = vsel %vm389_vm5, %v601_v37, %v582_v28 }
 0x2bb   : > { %v596_v44 = vperm.slane %v590_v41, %v1339_v50  ;;  %v608_v42 = vperm.slane %v602_v43, %v1339_v50  ;;  %v617_v45 = vrot.slane %v612_v40, 4  ;;  %v619_v46 = vrot.slane %v600_v39, 4 }
 0x2bd   : > { %v613_v47 = vrot.slane %v608_v42, 4  ;;  %v615_v48 = vrot.slane %v596_v44, 4  ;;  %v618_v49 = vsel %vm389_vm5, %v617_v45, %v600_v39  ;;  %v620_v51 = vsel %vm389_vm5, %v612_v40, %v619_v46 }
 0x2be   : > { %v632_v52 = vpack.c.bf16 %v618_v49, %v618_v49  ;;  %v633_v53 = vpack.c.bf16 %v620_v51, %v620_v51 }
 0x2bf   : > { %v614_v50 = vsel %vm389_vm5, %v613_v47, %v596_v44  ;;  %v616_v54 = vsel %vm389_vm5, %v608_v42, %v615_v48 }
 0x2c0   : > { %v630_v55 = vpack.c.bf16 %v614_v50, %v614_v50  ;;  %v631_v56 = vpack.c.bf16 %v616_v54, %v616_v54  ;;  %636 = vst.msk [vmem:[%s302_s27 + $0x8] sm:$0xf] %vm625_vm6, %v632_v52 }
 0x2c1   : > { %637 = vst.msk [vmem:[%s302_s27 + $0xc] sm:$0xf] %vm625_vm6, %v633_v53 }
 0x2c2   : > { %634 = vst.msk [vmem:[%s302_s27] sm:$0xf] %vm625_vm6, %v630_v55 }
 0x2c3   : > { %635 = vst.msk [vmem:[%s302_s27 + $0x4] sm:$0xf] %vm625_vm6, %v631_v56 }
 0x2c4   : > { %1111 = shalt.err (!%p1108_p7)
}
 0x2c5   : > { %862 = dma.vmem_to_hbm [thread:$0]  (%p1295_p2), %s676_s7, 256, %s678_s6, %s644_s21, %s1187_s16, %s1187_s16, %s1188_s30  }
 0x2c6 PF: > { %s692_s25 = sand.u32 1, %s1154_s18   ;;  %p877_p11 = pnand %p821_p8, %p1266_p5 }
 0x2c7   : > { %s693_s10 = scalar_lea.sflag [#allocation4], %s692_s25 }
 0x2c8   : > { %p878_p12 = pneg %p877_p11 }
 0x2ca   : > { %1145 = dma.done.wait (%p878_p12), %s693_s10, 256  }
 0x2cb   : > { %1147 = vsyncadd (%p878_p12), %s693_s10, 4294967040  ;;  %s703_s26 = scalar_lea.sflag [#allocation10], %s692_s25 }
 0x2cc   : > { %1149 = dma.done.wait (%p878_p12), %s703_s26, 256  }
 0x2cd   : > { %1151 = vsyncadd (%p878_p12), %s703_s26, 4294967040  ;;  %s26_s23 = sadd.s32 1, %s1174_s23   ;;  %s1503_s18 = smov %s1158_s19 }
 0x2ce   : > { %p23_p13 = scmp.ge.s32.totalorder %s26_s23, 4   ;;  %s1504_s19 = smov %s1162_s20 }
 0x2cf   : > { %s1505_s20 = smov %s1305_s9  ;;  %s1506_s21 = smov %s1170_s22 }
 0x2d0   : > { %s1507_s22 = smov %s1509_s17  ;;  %25 = sbr.rel (!%p23_p13) target bundleno = 9 (0x9), region = 106 }
 0x2d5   :  { %709 = vsyncpa [#allocation3], 1 }
 0x2d6   :  { %711 = vsyncpa [#allocation3 + $0x1], 1 }
 0x2d7   :  { %712 = vsyncpa [#allocation6], 1 }
 0x2d8   :  { %713 = vsyncpa [#allocation4], 1 }
 0x2d9   :  { %715 = vsyncpa [#allocation4 + $0x1], 1 }
 0x2da   :  { %716 = vsyncpa [#allocation10], 1 }
 0x2db   :  { %718 = vsyncpa [#allocation10 + $0x1], 1 }

</bundles_post_ra>
